<compile_context>
chip_gen: v5e
topology: v5e:2x2
jax: 0.10.0
libtpu: 0.0.40
codegen_flags: <defaults>
</compile_context>

<pallas_src>
import functools

import jax
import jax.numpy as jnp
from jax.experimental import pallas as pl
from jax.experimental.pallas import tpu as pltpu

_EPS = 1e-6          # matches torch.nn.functional.pairwise_distance default eps
_NUM_CORES = 2       # leading "parallel" grid axis (dual TensorCore on v7x; harmless elsewhere)


def _round_up(x, m):
    return ((x + m - 1) // m) * m


def _contrastive_kernel(o1_ref, o2_ref, lbl_ref, part_ref, acc_ref, *,
                        margin, d_real, b_real, tb, tiles_per_core):
    c = pl.program_id(0)          # core-split axis ("parallel")
    j = pl.program_id(1)          # batch-tile axis ("arbitrary", reduction)

    @pl.when(j == 0)
    def _():
        acc_ref[...] = jnp.zeros_like(acc_ref)

    # Load in native dtype, cast in-register (keeps HBM traffic at native width).
    o1 = o1_ref[...].astype(jnp.float32)                         # (TB, Dp)
    o2 = o2_ref[...].astype(jnp.float32)                         # (TB, Dp)
    diff = o1 - o2 + _EPS                                        # torch adds eps to the diff
    dp = o1.shape[-1]
    if dp != d_real:                                             # mask padded feature lanes
        col = jax.lax.broadcasted_iota(jnp.int32, (tb, dp), 1)
        diff = jnp.where(col < d_real, diff, 0.0)

    d2 = jnp.sum(diff * diff, axis=-1, keepdims=True)            # (TB, 1) squared L2
    d = jnp.sqrt(d2)                                             # euclidean distance
    lbl = lbl_ref[...].astype(jnp.float32)                       # (TB, 1)
    hinge = jnp.maximum(margin - d, 0.0)                         # clamp(margin - d, min=0)
    per_row = lbl * d2 + (1.0 - lbl) * (hinge * hinge)           # (TB, 1)

    # Mask rows that are batch padding (B rounded up to NUM_CORES*TB).
    row0 = (c * tiles_per_core + j) * tb
    row = jax.lax.broadcasted_iota(jnp.int32, (tb, 1), 0) + row0
    per_row = jnp.where(row < b_real, per_row, 0.0)

    acc_ref[...] += jnp.sum(per_row, axis=0, keepdims=True)      # (1, 1) partial sum

    @pl.when(j == tiles_per_core - 1)
    def _():
        # Per-core partial sum, broadcast into a lane-dense (8, 128) output tile.
        part_ref[...] = jnp.broadcast_to(acc_ref[...], part_ref.shape)


def contrastive_loss(output1, output2, label, margin=1.0, block_rows=256):
    B, D = output1.shape
    Dp = _round_up(D, 128)                       # lane-dense feature dim
    TB = min(block_rows, _round_up(B, 8))        # batch tile (multiple of 8 sublanes)
    Bp = _round_up(B, _NUM_CORES * TB)           # batch padded to an even core/tile split
    tiles_per_core = Bp // (_NUM_CORES * TB)

    o1 = jnp.pad(output1, ((0, Bp - B), (0, Dp - D)))
    o2 = jnp.pad(output2, ((0, Bp - B), (0, Dp - D)))
    lbl = jnp.pad(label.astype(jnp.float32).reshape(B, 1), ((0, Bp - B), (0, 0)))

    kernel = functools.partial(
        _contrastive_kernel,
        margin=float(margin), d_real=D, b_real=B, tb=TB, tiles_per_core=tiles_per_core)

    itemsize = jnp.dtype(output1.dtype).itemsize
    cost = pl.CostEstimate(
        flops=4 * B * D,
        transcendentals=B,                                   # one sqrt per row
        bytes_accessed=2 * B * D * itemsize + B * 4 + 4,
    )

    out = pl.pallas_call(
        kernel,
        out_shape=jax.ShapeDtypeStruct((_NUM_CORES * 8, 128), jnp.float32),
        grid=(_NUM_CORES, tiles_per_core),
        in_specs=[
            pl.BlockSpec((TB, Dp), lambda c, j: (c * tiles_per_core + j, 0)),
            pl.BlockSpec((TB, Dp), lambda c, j: (c * tiles_per_core + j, 0)),
            pl.BlockSpec((TB, 1),  lambda c, j: (c * tiles_per_core + j, 0)),
        ],
        out_specs=pl.BlockSpec((8, 128), lambda c, j: (c, 0)),
        scratch_shapes=[pltpu.VMEM((1, 1), jnp.float32)],
        compiler_params=pltpu.CompilerParams(
            dimension_semantics=("parallel", "arbitrary"),
            # 48 MiB: raises v5e's 16 MiB default, comfortable on v6e, within v7x's 64 MiB.
            vmem_limit_bytes=48 * 1024 * 1024,
        ),
        cost_estimate=cost,
    )(o1, o2, lbl)

    partials = out[::8, 0]                        # one partial sum per core
    return jnp.sum(partials) / B


def _reference(output1, output2, label, margin=1.0):
    # pure-JAX reference mirroring the PyTorch math
    o1 = output1.astype(jnp.float32)
    o2 = output2.astype(jnp.float32)
    d = jnp.sqrt(jnp.sum((o1 - o2 + _EPS) ** 2, axis=-1))
    hinge = jnp.maximum(margin - d, 0.0)
    return jnp.mean(label * d**2 + (1.0 - label) * hinge**2)


if __name__ == "__main__":
    key = jax.random.PRNGKey(0)
    k1, k2, k3, k4, k5, k6 = jax.random.split(key, 6)

    # Small, nicely shaped case.
    B, D = 8, 32
    output1 = jax.random.normal(k1, (B, D), dtype=jnp.float32)
    output2 = jax.random.normal(k2, (B, D), dtype=jnp.float32)
    label = jax.random.bernoulli(k3, 0.5, (B,)).astype(jnp.float32)

    loss = jax.block_until_ready(contrastive_loss(output1, output2, label))
    ref = _reference(output1, output2, label)
    assert jnp.allclose(loss, ref, rtol=1e-5, atol=1e-5), (loss, ref)

    # Ragged case exercising batch/feature padding + masking, bf16 inputs (native-dtype DMA).
    B2, D2 = 13, 200
    o1b = jax.random.normal(k4, (B2, D2), dtype=jnp.bfloat16)
    o2b = jax.random.normal(k5, (B2, D2), dtype=jnp.bfloat16)
    lblb = jax.random.bernoulli(k6, 0.5, (B2,)).astype(jnp.float32)

    loss2 = jax.block_until_ready(contrastive_loss(o1b, o2b, lblb))
    ref2 = _reference(o1b, o2b, lblb)
    assert jnp.allclose(loss2, ref2, rtol=1e-3, atol=1e-3), (loss2, ref2)

    print("KERNEL_OK")
</pallas_src>

<mosaic_0001>
module attributes {stable_mosaic.version = 11 : i64} {
  func.func @_contrastive_kernel(%arg0: i32, %arg1: i32, %arg2: memref<8x128xf32, #tpu.memory_space<vmem>>, %arg3: memref<8x128xf32, #tpu.memory_space<vmem>>, %arg4: memref<8x1xf32, #tpu.memory_space<vmem>>, %arg5: memref<8x128xf32, #tpu.memory_space<vmem>>, %arg6: memref<1x1xf32, #tpu.memory_space<vmem>>) attributes {dimension_semantics = [#tpu.dimension_semantics<parallel>, #tpu.dimension_semantics<arbitrary>], iteration_bounds = array<i64: 2, 1>, scalar_prefetch = 0 : i64, scratch_operands = 1 : i64, tpu.core_type = #tpu.core_type<tc>, window_params = [{transform_indices = @transform_0, window_bounds = array<i64: 8, 128>}, {transform_indices = @transform_1, window_bounds = array<i64: 8, 128>}, {transform_indices = @transform_2, window_bounds = array<i64: 8, 1>}, {transform_indices = @transform_3, window_bounds = array<i64: 8, 128>}]} {
    %c0_i32 = arith.constant 0 : i32
    %0 = arith.cmpi eq, %arg1, %c0_i32 : i32
    %1 = arith.extui %0 : i1 to i32
    %c0_i32_0 = arith.constant 0 : i32
    %2 = arith.cmpi ne, %1, %c0_i32_0 : i32
    scf.if %2 {
      %cst_20 = arith.constant 0.000000e+00 : f32
      %46 = vector.broadcast %cst_20 : f32 to vector<1x1xf32>
      %c0_21 = arith.constant 0 : index
      %c0_22 = arith.constant 0 : index
      %47 = vector.load %arg6[%c0_21, %c0_22] : memref<1x1xf32, #tpu.memory_space<vmem>>, vector<1x1xf32>
      tpu.vector_store %arg6[%c0_21, %c0_22], %46 {strides = array<i32>} : memref<1x1xf32, #tpu.memory_space<vmem>>, vector<1x1xf32>,
    } else {
    }
    %c0 = arith.constant 0 : index
    %c0_1 = arith.constant 0 : index
    %3 = vector.load %arg2[%c0, %c0_1] : memref<8x128xf32, #tpu.memory_space<vmem>>, vector<8x128xf32>
    %c0_2 = arith.constant 0 : index
    %c0_3 = arith.constant 0 : index
    %4 = vector.load %arg3[%c0_2, %c0_3] : memref<8x128xf32, #tpu.memory_space<vmem>>, vector<8x128xf32>
    %5 = arith.subf %3, %4 : vector<8x128xf32>
    %cst = arith.constant 9.99999997E-7 : f32
    %6 = vector.broadcast %cst : f32 to vector<8x128xf32>
    %7 = arith.addf %5, %6 : vector<8x128xf32>
    %8 = tpu.iota {dimensions = array<i32: 1>} : vector<8x128xi32>
    %c32_i32 = arith.constant 32 : i32
    %9 = vector.broadcast %c32_i32 : i32 to vector<8x128xi32>
    %10 = arith.cmpi slt, %8, %9 : vector<8x128xi32>
    %cst_4 = arith.constant 0.000000e+00 : f32
    %11 = vector.broadcast %cst_4 : f32 to vector<8x128xf32>
    %12 = arith.select %10, %7, %11 : vector<8x128xi1>, vector<8x128xf32>
    %13 = arith.mulf %12, %12 : vector<8x128xf32>
    %cst_5 = arith.constant dense<0.000000e+00> : vector<8xf32>
    %14 = vector.multi_reduction <add>, %13, %cst_5 [1] : vector<8x128xf32> to vector<8xf32>
    %15 = vector.shape_cast %14 : vector<8xf32> to vector<8x1xf32>
    %16 = math.sqrt %15 : vector<8x1xf32>
    %c0_6 = arith.constant 0 : index
    %c0_7 = arith.constant 0 : index
    %17 = vector.load %arg4[%c0_6, %c0_7] : memref<8x1xf32, #tpu.memory_space<vmem>>, vector<8x1xf32>
    %cst_8 = arith.constant 1.000000e+00 : f32
    %18 = vector.broadcast %cst_8 : f32 to vector<8x1xf32>
    %19 = arith.subf %18, %16 : vector<8x1xf32>
    %cst_9 = arith.constant 0.000000e+00 : f32
    %20 = vector.broadcast %cst_9 : f32 to vector<8x1xf32>
    %21 = arith.maximumf %19, %20 : vector<8x1xf32>
    %22 = arith.mulf %17, %15 : vector<8x1xf32>
    %cst_10 = arith.constant 1.000000e+00 : f32
    %23 = vector.broadcast %cst_10 : f32 to vector<8x1xf32>
    %24 = arith.subf %23, %17 : vector<8x1xf32>
    %25 = arith.mulf %21, %21 : vector<8x1xf32>
    %26 = arith.mulf %24, %25 : vector<8x1xf32>
    %27 = arith.addf %22, %26 : vector<8x1xf32>
    %c1_i32 = arith.constant 1 : i32
    %28 = arith.muli %arg0, %c1_i32 : i32
    %29 = arith.addi %28, %arg1 : i32
    %c8_i32 = arith.constant 8 : i32
    %30 = arith.muli %29, %c8_i32 : i32
    %31 = tpu.iota {dimensions = array<i32: 0>} : vector<8x1xi32>
    %32 = vector.broadcast %30 : i32 to vector<8x1xi32>
    %33 = arith.addi %31, %32 : vector<8x1xi32>
    %c8_i32_11 = arith.constant 8 : i32
    %34 = vector.broadcast %c8_i32_11 : i32 to vector<8x1xi32>
    %35 = arith.cmpi slt, %33, %34 : vector<8x1xi32>
    %cst_12 = arith.constant 0.000000e+00 : f32
    %36 = vector.broadcast %cst_12 : f32 to vector<8x1xf32>
    %37 = arith.select %35, %27, %36 : vector<8x1xi1>, vector<8x1xf32>
    %c0_13 = arith.constant 0 : index
    %c0_14 = arith.constant 0 : index
    %38 = vector.load %arg6[%c0_13, %c0_14] : memref<1x1xf32, #tpu.memory_space<vmem>>, vector<1x1xf32>
    %cst_15 = arith.constant dense<0.000000e+00> : vector<1xf32>
    %39 = vector.multi_reduction <add>, %37, %cst_15 [0] : vector<8x1xf32> to vector<1xf32>
    %40 = vector.shape_cast %39 : vector<1xf32> to vector<1x1xf32>
    %41 = arith.addf %38, %40 : vector<1x1xf32>
    %c0_16 = arith.constant 0 : index
    %c0_17 = arith.constant 0 : index
    %42 = vector.load %arg6[%c0_16, %c0_17] : memref<1x1xf32, #tpu.memory_space<vmem>>, vector<1x1xf32>
    tpu.vector_store %arg6[%c0_16, %c0_17], %41 {strides = array<i32>} : memref<1x1xf32, #tpu.memory_space<vmem>>, vector<1x1xf32>,
    %c0_i32_18 = arith.constant 0 : i32
    %43 = arith.cmpi eq, %arg1, %c0_i32_18 : i32
    %44 = arith.extui %43 : i1 to i32
    %c0_i32_19 = arith.constant 0 : i32
    %45 = arith.cmpi ne, %44, %c0_i32_19 : i32
    scf.if %45 {
      %c0_20 = arith.constant 0 : index
      %c0_21 = arith.constant 0 : index
      %46 = vector.load %arg6[%c0_20, %c0_21] : memref<1x1xf32, #tpu.memory_space<vmem>>, vector<1x1xf32>
      %47 = vector.shape_cast %46 : vector<1x1xf32> to vector<1x1xf32>
      %48 = vector.broadcast %47 : vector<1x1xf32> to vector<8x128xf32>
      %c0_22 = arith.constant 0 : index
      %c0_23 = arith.constant 0 : index
      %49 = vector.load %arg5[%c0_22, %c0_23] : memref<8x128xf32, #tpu.memory_space<vmem>>, vector<8x128xf32>
      tpu.vector_store %arg5[%c0_22, %c0_23], %48 {strides = array<i32>} : memref<8x128xf32, #tpu.memory_space<vmem>>, vector<8x128xf32>,
    } else {
    }
    return
  }
  func.func @transform_0(%arg0: i32, %arg1: i32) -> (i32, i32) {
    %c1_i32 = arith.constant 1 : i32
    %0 = arith.muli %arg0, %c1_i32 : i32
    %1 = arith.addi %0, %arg1 : i32
    %c0_i32 = arith.constant 0 : i32
    %c0_i32_0 = arith.constant 0 : i32
    return %1, %c0_i32 : i32, i32
  }
  func.func @transform_1(%arg0: i32, %arg1: i32) -> (i32, i32) {
    %c1_i32 = arith.constant 1 : i32
    %0 = arith.muli %arg0, %c1_i32 : i32
    %1 = arith.addi %0, %arg1 : i32
    %c0_i32 = arith.constant 0 : i32
    %c0_i32_0 = arith.constant 0 : i32
    return %1, %c0_i32 : i32, i32
  }
  func.func @transform_2(%arg0: i32, %arg1: i32) -> (i32, i32) {
    %c1_i32 = arith.constant 1 : i32
    %0 = arith.muli %arg0, %c1_i32 : i32
    %1 = arith.addi %0, %arg1 : i32
    %c0_i32 = arith.constant 0 : i32
    %c0_i32_0 = arith.constant 0 : i32
    return %1, %c0_i32 : i32, i32
  }
  func.func @transform_3(%arg0: i32, %arg1: i32) -> (i32, i32) {
    %c0_i32 = arith.constant 0 : i32
    %c0_i32_0 = arith.constant 0 : i32
    return %arg0, %c0_i32 : i32, i32
  }
}

</mosaic_0001>

<bundles_post_ra>
// kernel: tpu_custom_call.1
= control target key start
LH: loop header
LB: loop body
LE: loop exit
PB: predicated region body
PF: predicated region fallthrough
CT: control target
= control target key end

     0   :  { %8 = vsyncpa [#allocation4], 0  ;;  %s797_s0 = inlined_call_operand.vmem [shape: f32[16,128], index: 0, kind: input, shape index: {}]   ;;  %s798_s1 = inlined_call_operand.hbm [shape: f32[16,128], index: 1, kind: input, shape index: {}]   ;;  %s799_s2 = inlined_call_operand.vmem [shape: f32[16,1], index: 2, kind: input, shape index: {}]   ;;  %s800_s3 = inlined_call_operand.hbm [shape: f32[16,128], index: 3, kind: output, shape index: {}]  }
   0x1   :  { %10 = vsyncpa [#allocation4 + $0x1], 0 }
   0x2   :  { %11 = vsyncpa [#allocation5], 0 }
   0x3   :  { %13 = vsyncpa [#allocation5 + $0x1], 0  ;;  %s659_s12 = smov 0   ;;  %s661_s13 = smov 0  }
   0x4   :  { %s663_s14 = smov 0   ;;  %s665_s15 = smov 0  }
   0x5   :  { %s667_s16 = smov 0   ;;  %s669_s17 = smov 0  }
   0x6 LB: > { %s439_s18 = sadd.s32 4294967295, %s635_s17   ;;  %s440_s19 = sadd.s32 4294967294, %s635_s17   ;;  %s635_s17 = sphi %s669_s17, %s19_s17   ;;  %s631_s16 = sphi %s667_s16, %s809_s16   ;;  %s627_s15 = sphi %s665_s15, %s808_s15   ;;  %s623_s14 = sphi %s663_s14, %s807_s14   ;;  %s619_s13 = sphi %s661_s13, %s806_s13   ;;  %s615_s12 = sphi %s659_s12, %s805_s12  }
   0x7   : > { %s31_s20 = sadd.s32 1, %s631_s16  ;;  %s68_s21 = sadd.s32 1, %s623_s14 }
   0x8   : > { %p33_p0 = scmp.ge.s32.totalorder %s31_s20, 2  ;;  %p75_p1 = scmp.ne.s32.totalorder %s623_s14, %s619_s13 }
   0x9   : > { %p76_p2 = scmp.eq.s32.totalorder %s635_s17, 0  ;;  %p81_p3 = scmp.ne.s32.totalorder %s619_s13, %s615_s12 }
   0xa   : > { %s811_s20 = smov (%p33_p0, %s31_s20), 0  ;;  %p82_p5 = scmp.eq.s32.totalorder %s439_s18, 0 }
   0xb   : > { %p700_p4 = por %p76_p2, %p75_p1  ;;  %s65_s23 = ssub.s32 %s631_s16, %s811_s20 }
   0xc   : > { %p133_p6 = scmp.eq.s32.totalorder %s439_s18, 1  ;;  %p66_p7 = scmp.eq.s32.totalorder %s65_s23, 0 }
   0xd   : > { %p706_p8 = por %p82_p5, %p81_p3  ;;  %p139_p10 = scmp.eq.s32.totalorder %s440_s19, 1 }
   0xe   : > { %p710_p9 = por %p133_p6, %p75_p1  ;;  %p442_p12 = scmp.ge.s32.totalorder %s635_s17, 2 }
   0xf   : > { %s715_s26 = scalar_select %p66_p7, %s623_s14, %s68_s21  }
  0x10   : > { %p717_p11 = por %p139_p10, %p81_p3  ;;  %p467_p13 = scmp.lt.s32.totalorder %s635_s17, 2 }
  0x11   : > { %s168_s28 = sand.u32 1, %s623_s14   ;;  %s444_s30 = sshll.u32 %s631_s16, 3 }
  0x12   : > { %s443_s29 = sshll.u32 %s168_s28, 3  ;;  %s177_s6 = scalar_lea.hbm %s798_s1, %s444_s30 }
  0x13   : > { %s172_s7 = scalar_lea.vmem [#allocation3], %s443_s29  ;;  %s179_s9 = sshll.u32 %s177_s6, 4  ;;  %s180_s9 = int_to_ptr.hbm [resolvable:$true] %s179_s9 }
  0x14   : > { %s181_s8 = sshll.u32 %s172_s7, 4  ;;  %p460_p0 = pnand %p467_p13, %p700_p4  ;;  %s182_s8 = int_to_ptr.vmem [resolvable:$true] %s181_s8 }
  0x15   : > { %p445_p1 = scmp.ge.s32.totalorder %s635_s17, 1  ;;  %p195_p2 = scmp.lt.s32.totalorder %s635_s17, 3 }
  0x16   : > { %s169_s10 = scalar_lea.sflag [#allocation4], %s168_s28 }
  0x17   : > { %462 = dma.hbm_to_vmem [thread:$0]  (!%p460_p0), %s180_s9, 128, %s182_s8, %s169_s10  }
  0x18   : > { %p196_p3 = pnand %p445_p1, %p195_p2 }
  0x19   : > { %s733_s11 = sand.u32 (!%p196_p3), 1, %s619_s13  }
  0x1a   : > { %199 = sbr.rel (%p196_p3) target bundleno = 335 (0x14f), region = 32  ;;  %s446_s18 = sshll.u32 (!%p196_p3), %s733_s11, 3 }
  0x1b   : > { %s202_s19 = scalar_lea.sflag (!%p196_p3), [#allocation4], %s733_s11  ;;  %s205_s21 = scalar_lea.vmem (!%p196_p3), [#allocation3], %s446_s18 }
  0x1f   : > { %606 = dma.done.wait (%p706_p8), %s202_s19, 128  }
  0x20   : > { %608 = vsyncadd (%p706_p8), %s202_s19, 4294967168  ;;  %vm256_vm0 = vcmask 0   ;;  %p240_p4 = scmp.lt.s32.totalorder %s627_s15, 1  ;;  %v637_v0 = vmov 0.0   ;;  %v262_v1 = vlaneseq  ;;  %v259_v4 = vld [vmem:[%s205_s21] sm:$0xff]  ;;  %v638_v16 = vmov 0  }
  0x21   : > { %257 = vst.msk [vmem:[#allocation2] sm:$0x1] %vm256_vm0, %v637_v0  ;;  %519 = vset.pattern.permute.xlu0 %v638_v16  ;;  %s450_s24 = sshll.u32 %s627_s15, 3  ;;  %vm298_vm5 = vcmask 7168   ;;  %s238_s10 = scalar_lea.vmem [#allocation6], %s446_s18 }
  0x22   : > { %s241_s22 = scalar_select %p240_p4, %s627_s15, 1  ;;  %v263_v2 = vand.u32 127, %v262_v1  ;;  %v292_v20 = vshrl.u32 %v262_v1, 7  ;;  %v293_v22 = vstv %s450_s24 }
  0x23   : > { %s331_s9 = scalar_lea.hbm %s800_s3, %s450_s24  ;;  %s333_s19 = sshll.u32 %s238_s10, 4  ;;  %s334_s19 = int_to_ptr.vmem [resolvable:$true] %s333_s19 }
  0x24   : > { %s448_s23 = sshll.u32 %s241_s22, 3  ;;  %vm264_vm1 = vcmp.lt.s32.totalorder %v263_v2, 32  ;;  %v294_v27 = vadd.s32 %v293_v22, %v292_v20  ;;  %s335_s21 = sshll.u32 %s331_s9, 4  ;;  %s336_s21 = int_to_ptr.hbm [resolvable:$true] %s335_s21 }
  0x25   : > { %s243_s30 = scalar_lea.vmem %s797_s0, %s448_s23  ;;  %s250_s6 = scalar_lea.vmem %s799_s2, %s448_s23 }
  0x26   : > { %v258_v3 = vld [vmem:[%s243_s30] sm:$0xff]  ;;  %vm295_vm4 = vcmp.lt.s32.totalorder %v294_v27, 8  ;;  %s321_s22 = scalar_lea.sflag [#allocation5], %s733_s11  ;;  %s567_s23 = sshra.s32 %s336_s21, 4  ;;  %s568_s23 = int_to_ptr.hbm [resolvable:$true] %s567_s23 }
  0x27   : > { %v260_v5 = vsub.f32 %v258_v3, %v259_v4  ;;  %v281_v24 = vld [vmem:[%s250_s6] sm:$0xff]  ;;  %s569_s28 = scalar_lea.hbm %s568_s23, 8  ;;  %s573_s30 = scalar_lea.hbm %s800_s3, 16 }
  0x28   : > { %v285_v25 = vsub.f32 1.0, %v281_v24  ;;  %v297_v39 = vld [vmem:[#allocation2] sm:$0x1]  ;;  %p570_p5 = scmp.ne.s32.totalorder %s568_s23, %s569_s28  ;;  %p574_p8 = scmp.lt.s32.totalorder %s568_s23, %s800_s3 }
  0x29   : > { %v261_v6 = vadd.f32 1e-06, %v260_v5  ;;  %p575_p10 = scmp.lt.s32.totalorder %s573_s30, %s569_s28 }
  0x2a   : > { %p571_p6 = pnand %p570_p5, %p710_p9 }
  0x2b   : > { %v265_v7 = vsel %vm264_vm1, %v261_v6, 0.0  ;;  %p576_p13 = por %p575_p10, %p574_p8 }
  0x2c   : > { %v266_v8 = vmul.f32 %v265_v7, %v265_v7  ;;  %p572_p7 = pneg %p571_p6 }
  0x2e   : > { %267 = vadd.xlane.f32.xlu0 %v266_v8  ;;  %p577_p0 = pnand %p576_p13, %p572_p7 }
  0xa1   : > { %v268_v9 = vpop.xlane.xlu0 %267 }
  0xa2   : > { %521 = vrsqrt.f32 %v268_v9  ;;  %vm276_vm2 = vcmp.eq.f32.partialorder %v268_v9, inf  ;;  %v279_v18 = vand.u32 2147483648, %v268_v9  ;;  %vm278_vm3 = vcmp.eq.f32.partialorder %v268_v9, 0.0 }
  0xa3   : > { %v284_v29 = vmul.f32 %v281_v24, %v268_v9 }
  0xa8   : > { %v522_v10 = vpop.eup %521 }
  0xa9   : > { %v270_v11 = vmul.f32 %v522_v10, %v268_v9 }
  0xab   : > { %v271_v12 = vmul.f32 %v522_v10, %v270_v11 }
  0xad   : > { %v272_v13 = vmul.f32 0.5, %v271_v12 }
  0xaf   : > { %v273_v14 = vsub.f32 1.5, %v272_v13 }
  0xb1   : > { %v274_v15 = vmul.f32 %v522_v10, %v273_v14 }
  0xb3   : > { %v275_v17 = vmul.f32 %v274_v15, %v268_v9 }
  0xb5   : > { %v277_v19 = vsel %vm276_vm2, %v268_v9, %v275_v17 }
  0xb6   : > { %v280_v21 = vsel %vm278_vm3, %v279_v18, %v277_v19 }
  0xb7   : > { %v282_v23 = vsub.f32 1.0, %v280_v21 }
  0xb9   : > { %v283_v26 = vmax.f32 %v282_v23, 0.0 }
  0xbb   : > { %v286_v28 = vmul.f32 %v283_v26, %v283_v26 }
  0xbd   : > { %v287_v30 = vmul.f32 %v286_v28, %v285_v25 }
  0xbf   : > { %v288_v31 = vadd.f32 %v287_v30, %v284_v29 }
  0xc1   : > { %v296_v32 = vsel %vm295_vm4, %v288_v31, 0.0 }
  0xc2   : > { %v299_v33 = vsel %vm298_vm5, %v296_v32, 0.0 }
  0xc3   : > { %v300_v34 = vrot.slane %v299_v33, 4 }
  0xc5   : > { %v301_v35 = vadd.f32 %v300_v34, %v299_v33 }
  0xc7   : > { %v302_v36 = vrot.slane %v301_v35, 2 }
  0xc9   : > { %v303_v37 = vadd.f32 %v302_v36, %v301_v35 }
  0xcb   : > { %v304_v38 = vrot.slane %v303_v37, 1 }
  0xcd   : > { %v305_v40 = vadd.f32 %v304_v38, %v303_v37 }
  0xcf   : > { %v306_v41 = vadd.f32 %v305_v40, %v297_v39 }
  0xd1   : > { %308 = vst.msk [vmem:[#allocation2] sm:$0x1] %vm256_vm0, %v306_v41 }
  0xd8   : > { %v520_v42 = vld [vmem:[#allocation2] ss:$0 sm:$0xff] }
  0xd9   : > { %316 = vperm.xlu0 %519, %v520_v42  }
 0x14b   : > { %v317_v43 = vpop.permute.xlu0 %316 }
 0x14c   : > { %319 = vst [vmem:[%s238_s10] sm:$0xff] %v317_v43 }
 0x14d   : > { %580 = shalt.err (!%p577_p0)
}
 0x14e   : > { %457 = dma.vmem_to_hbm [thread:$0]  (%p710_p9), %s334_s19, 128, %s336_s21, %s321_s22  }
 0x14f PF: > { %s347_s11 = sand.u32 1, %s615_s12   ;;  %p464_p1 = pnand %p442_p12, %p717_p11 }
 0x150   : > { %s348_s4 = scalar_lea.sflag [#allocation5], %s347_s11 }
 0x151   : > { %p465_p2 = pneg %p464_p1 }
 0x153   : > { %610 = dma.done.wait (%p465_p2), %s348_s4, 128  }
 0x154   : > { %612 = vsyncadd (%p465_p2), %s348_s4, 4294967168  ;;  %s19_s17 = sadd.s32 1, %s635_s17   ;;  %s805_s12 = smov %s619_s13 }
 0x155   : > { %p16_p3 = scmp.ge.s32.totalorder %s19_s17, 4   ;;  %s806_s13 = smov %s623_s14 }
 0x156   : > { %s807_s14 = smov %s715_s26  ;;  %s808_s15 = smov %s631_s16 }
 0x157   : > { %s809_s16 = smov %s811_s20  ;;  %18 = sbr.rel (!%p16_p3) target bundleno = 6 (0x6), region = 91 }
 0x15c   :  { %354 = vsyncpa [#allocation4], 1 }
 0x15d   :  { %356 = vsyncpa [#allocation4 + $0x1], 1 }
 0x15e   :  { %357 = vsyncpa [#allocation5], 1 }
 0x15f   :  { %359 = vsyncpa [#allocation5 + $0x1], 1 }

</bundles_post_ra>
